<compile_context>
chip_gen: v7x
topology: tpu7x:2x2x1
jax: 0.10.0
libtpu: 0.0.40
codegen_flags: <defaults>
</compile_context>

<pallas_src>
import functools

import jax
import jax.numpy as jnp
from jax.experimental import pallas as pl
from jax.experimental.pallas import tpu as pltpu

EPS = 1e-10


def _cdiv(a, b):
    return -(-a // b)


def _round_up(x, m):
    return _cdiv(x, m) * m


def _kappa_cm_kernel(logits_ref, labels_ref, out_ref, *,
                     n_valid, n_classes, block_rows, blocks_per_core):
    """Accumulates per-(sublane, lane) partials of the confusion matrix.

    logits_ref: (C, S, 128) native dtype    labels_ref: (S, 128) int8
    out_ref:    (1, C*C, 8, 128) f32 partial cm, resident across the k axis
    """
    C, S = n_classes, block_rows
    core = pl.program_id(0)          # "parallel" axis: TensorCore split
    k = pl.program_id(1)             # "arbitrary" axis: batch reduction

    @pl.when(k == 0)
    def _init():
        out_ref[...] = jnp.zeros_like(out_ref)

    # Softmax over classes: static unroll over C -> dense (S,128) VPU/EUP work.
    xs = [logits_ref[i].astype(jnp.float32) for i in range(C)]
    m = xs[0]
    for i in range(1, C):
        m = jnp.maximum(m, xs[i])
    es = [jnp.exp(x - m) for x in xs]                 # EUP
    den = es[0]
    for i in range(1, C):
        den = den + es[i]
    inv = pl.reciprocal(den, approx=True)             # EUP slot, off the VALU
    ps = [e * inv for e in es]                        # probabilities

    # Validity mask from the *logical* sample index (covers alignment padding
    # and redundant/partial boundary blocks).  Folded into the label select so
    # it is never applied to the wide probability slabs.
    row = jax.lax.broadcasted_iota(jnp.int32, (S, 128), 0)
    col = jax.lax.broadcasted_iota(jnp.int32, (S, 128), 1)
    base_row = (core * blocks_per_core + k) * S
    valid = (base_row + row) * 128 + col < n_valid

    lab = labels_ref[...].astype(jnp.int32)           # (S, 128)

    # cm[i, j] += sum over samples with label i of p_j, kept per (sublane,
    # lane); the where-select also scrubs NaN/garbage from masked positions.
    for i in range(C):
        sel = jnp.logical_and(lab == i, valid)
        for j in range(C):
            w = jnp.where(sel, ps[j], 0.0)                      # (S, 128)
            part = jnp.sum(w.reshape(S // 8, 8, 128), axis=0)   # (8, 128), VPU
            out_ref[0, i * C + j] += part


def kappa_loss(model_output, ground_truth, n_classes, *,
               tile_n=65536, wire_dtype=None):
    """Quadratic-weighted-kappa loss; mirrors the PyTorch KappaLoss.forward."""
    N, C = model_output.shape
    assert C == n_classes
    assert C <= 16  # TODO(synk): add an MXU dot path for large class counts.

    ROWS_ALIGN = 32                    # int8 label sublane tile (32, 128)
    N_pad = _round_up(N, ROWS_ALIGN * 128)
    NB = N_pad // 128                  # 128-lane rows; multiple of 32, >= 32
    pad = N_pad - N

    logits = model_output if wire_dtype is None else model_output.astype(wire_dtype)
    labels = ground_truth.reshape(N).astype(jnp.int8)   # C < 128 -> int8 wire
    if pad:   # <= 4095 dummy samples; fuses into the transpose copy below
        logits = jnp.pad(logits, ((0, pad), (0, 0)))
        labels = jnp.pad(labels, ((0, pad),))

    # Lane-dense layout: classes leading, batch split as (rows, 128 lanes).
    # TODO(synk): producer-side (C, N) logits would remove this transpose copy.
    logits3 = logits.T.reshape(C, NB, 128)
    labels2 = labels.reshape(NB, 128)

    # Rows of 128 samples per tile (multiple of 32, capped for VMEM).
    rows = max(ROWS_ALIGN, min(tile_n // 128, 2048))
    S = min((rows // ROWS_ALIGN) * ROWS_ALIGN, NB)

    n_split = 2                                  # v7x: one half per TensorCore
    K = _cdiv(_cdiv(NB, n_split), S)             # row-blocks per core
    last_blk = _cdiv(NB, S) - 1                  # clamp -> no OOB DMA ever

    def logits_map(c, k):
        return (0, jnp.minimum(c * K + k, last_blk), 0)

    def labels_map(c, k):
        return (jnp.minimum(c * K + k, last_blk), 0)

    kernel = functools.partial(_kappa_cm_kernel, n_valid=N, n_classes=C,
                               block_rows=S, blocks_per_core=K)

    itemsize = jnp.dtype(logits3.dtype).itemsize
    vmem_need = (2 * C * S * 128 * itemsize      # double-buffered logits tiles
                 + 2 * S * 128                   # double-buffered int8 labels
                 + 2 * C * C * 8 * 128 * 4)      # resident cm partial block
    vmem_limit = int(min(max(2 * vmem_need, 8 << 20), 48 << 20))

    partials = pl.pallas_call(
        kernel,
        out_shape=jax.ShapeDtypeStruct((n_split, C * C, 8, 128), jnp.float32),
        grid_spec=pltpu.PrefetchScalarGridSpec(
            num_scalar_prefetch=0,
            grid=(n_split, K),
            in_specs=[
                pl.BlockSpec((C, S, 128), logits_map),
                pl.BlockSpec((S, 128), labels_map),
            ],
            out_specs=pl.BlockSpec((1, C * C, 8, 128),
                                   lambda c, k: (c, 0, 0, 0)),
        ),
        compiler_params=pltpu.CompilerParams(
            dimension_semantics=("parallel", "arbitrary"),
            vmem_limit_bytes=vmem_limit,
        ),
    )(logits3, labels2)

    # Tiny O(C^2) epilogue (per review: per-core partial cm summed in wrapper).
    cm = jnp.sum(partials, axis=(0, 2, 3)).reshape(C, C)
    idx = jnp.arange(C, dtype=jnp.float32)
    W = (idx[:, None] - idx[None, :]) ** 2
    E = jnp.outer(jnp.sum(cm, axis=1), jnp.sum(cm, axis=0)) / jnp.sum(cm)
    return jnp.sum(W * cm) / jnp.sum(W * E) + EPS


def _ref_kappa(logits, labels, C):
    # Pure-JAX reference mirroring the PyTorch module exactly.
    p = jax.nn.softmax(logits.astype(jnp.float32), axis=1)
    g = jax.nn.one_hot(labels, C, dtype=jnp.float32)
    W = jnp.asarray([[(i - j) ** 2 for j in range(C)] for i in range(C)],
                    dtype=jnp.float32)
    cm = g.T @ p
    E = jnp.outer(g.sum(0), p.sum(0)) / cm.sum()
    return (W * cm).sum() / (W * E).sum() + EPS


if __name__ == "__main__":
    n_classes = 3
    ground_truth = jnp.array([2, 0, 1, 2], dtype=jnp.int32)      # (N,) = (4,)
    key = jax.random.PRNGKey(0)
    model_output = jax.random.normal(key, (ground_truth.shape[0], n_classes),
                                     dtype=jnp.float32)          # (4, 3)

    loss_fn = jax.jit(lambda mo, gt: kappa_loss(mo, gt, n_classes))
    loss = jax.block_until_ready(loss_fn(model_output, ground_truth))

    ref = _ref_kappa(model_output, ground_truth, n_classes)
    # Tolerance covers the approximate EUP reciprocal used in the softmax
    # (~1e-4 relative); set approx=False in the kernel for tighter results.
    assert jnp.allclose(loss, ref, rtol=2e-3, atol=1e-6), (loss, ref)
    print("KERNEL_OK")
</pallas_src>

<mosaic_0001>
module attributes {stable_mosaic.version = 11 : i64} {
  func.func @_kappa_cm_kernel(%arg0: i32, %arg1: i32, %arg2: memref<3x32x128xf32, #tpu.memory_space<vmem>>, %arg3: memref<32x128xi8, #tpu.memory_space<vmem>>, %arg4: memref<1x9x8x128xf32, #tpu.memory_space<vmem>>) attributes {dimension_semantics = [#tpu.dimension_semantics<parallel>, #tpu.dimension_semantics<arbitrary>], iteration_bounds = array<i64: 2, 1>, scalar_prefetch = 0 : i64, scratch_operands = 0 : i64, tpu.core_type = #tpu.core_type<tc>, window_params = [{transform_indices = @transform_0, window_bounds = array<i64: 3, 32, 128>}, {transform_indices = @transform_1, window_bounds = array<i64: 32, 128>}, {transform_indices = @transform_2, window_bounds = array<i64: 1, 9, 8, 128>}]} {
    %c0_i32 = arith.constant 0 : i32
    %0 = arith.cmpi eq, %arg1, %c0_i32 : i32
    %1 = arith.extui %0 : i1 to i32
    %c0_i32_0 = arith.constant 0 : i32
    %2 = arith.cmpi ne, %1, %c0_i32_0 : i32
    scf.if %2 {
      %cst_94 = arith.constant 0.000000e+00 : f32
      %136 = vector.broadcast %cst_94 : f32 to vector<1x9x8x128xf32>
      %c0_95 = arith.constant 0 : index
      %c0_96 = arith.constant 0 : index
      %c0_97 = arith.constant 0 : index
      %c0_98 = arith.constant 0 : index
      %137 = vector.load %arg4[%c0_95, %c0_96, %c0_97, %c0_98] : memref<1x9x8x128xf32, #tpu.memory_space<vmem>>, vector<1x9x8x128xf32>
      tpu.vector_store %arg4[%c0_95, %c0_96, %c0_97, %c0_98], %136 {strides = array<i32>} : memref<1x9x8x128xf32, #tpu.memory_space<vmem>>, vector<1x9x8x128xf32>,
    } else {
    }
    %c0 = arith.constant 0 : index
    %c0_1 = arith.constant 0 : index
    %c0_2 = arith.constant 0 : index
    %3 = vector.load %arg2[%c0, %c0_1, %c0_2] : memref<3x32x128xf32, #tpu.memory_space<vmem>>, vector<1x32x128xf32>
    %4 = vector.shape_cast %3 : vector<1x32x128xf32> to vector<32x128xf32>
    %c1 = arith.constant 1 : index
    %c0_3 = arith.constant 0 : index
    %c0_4 = arith.constant 0 : index
    %5 = vector.load %arg2[%c1, %c0_3, %c0_4] : memref<3x32x128xf32, #tpu.memory_space<vmem>>, vector<1x32x128xf32>
    %6 = vector.shape_cast %5 : vector<1x32x128xf32> to vector<32x128xf32>
    %c2 = arith.constant 2 : index
    %c0_5 = arith.constant 0 : index
    %c0_6 = arith.constant 0 : index
    %7 = vector.load %arg2[%c2, %c0_5, %c0_6] : memref<3x32x128xf32, #tpu.memory_space<vmem>>, vector<1x32x128xf32>
    %8 = vector.shape_cast %7 : vector<1x32x128xf32> to vector<32x128xf32>
    %9 = arith.maximumf %4, %6 : vector<32x128xf32>
    %10 = arith.maximumf %9, %8 : vector<32x128xf32>
    %11 = arith.subf %4, %10 : vector<32x128xf32>
    %12 = math.exp %11 : vector<32x128xf32>
    %13 = arith.subf %6, %10 : vector<32x128xf32>
    %14 = math.exp %13 : vector<32x128xf32>
    %15 = arith.subf %8, %10 : vector<32x128xf32>
    %16 = math.exp %15 : vector<32x128xf32>
    %17 = arith.addf %12, %14 : vector<32x128xf32>
    %18 = arith.addf %17, %16 : vector<32x128xf32>
    %19 = tpu.reciprocal %18 {approx = true} : vector<32x128xf32> -> vector<32x128xf32>
    %20 = arith.mulf %12, %19 : vector<32x128xf32>
    %21 = arith.mulf %14, %19 : vector<32x128xf32>
    %22 = arith.mulf %16, %19 : vector<32x128xf32>
    %23 = tpu.iota {dimensions = array<i32: 0>} : vector<32x128xi32>
    %24 = tpu.iota {dimensions = array<i32: 1>} : vector<32x128xi32>
    %c1_i32 = arith.constant 1 : i32
    %25 = arith.muli %arg0, %c1_i32 : i32
    %26 = arith.addi %25, %arg1 : i32
    %c32_i32 = arith.constant 32 : i32
    %27 = arith.muli %26, %c32_i32 : i32
    %28 = vector.broadcast %27 : i32 to vector<32x128xi32>
    %29 = arith.addi %28, %23 : vector<32x128xi32>
    %c128_i32 = arith.constant 128 : i32
    %30 = vector.broadcast %c128_i32 : i32 to vector<32x128xi32>
    %31 = arith.muli %29, %30 : vector<32x128xi32>
    %32 = arith.addi %31, %24 : vector<32x128xi32>
    %c4_i32 = arith.constant 4 : i32
    %33 = vector.broadcast %c4_i32 : i32 to vector<32x128xi32>
    %34 = arith.cmpi slt, %32, %33 : vector<32x128xi32>
    %c0_7 = arith.constant 0 : index
    %c0_8 = arith.constant 0 : index
    %35 = vector.load %arg3[%c0_7, %c0_8] : memref<32x128xi8, #tpu.memory_space<vmem>>, vector<32x128xi8>
    %36 = arith.extsi %35 : vector<32x128xi8> to vector<32x128xi32>
    %c0_i32_9 = arith.constant 0 : i32
    %37 = vector.broadcast %c0_i32_9 : i32 to vector<32x128xi32>
    %38 = arith.cmpi eq, %36, %37 : vector<32x128xi32>
    %39 = arith.andi %38, %34 : vector<32x128xi1>
    %cst = arith.constant 0.000000e+00 : f32
    %40 = vector.broadcast %cst : f32 to vector<32x128xf32>
    %41 = arith.select %39, %20, %40 : vector<32x128xi1>, vector<32x128xf32>
    %42 = vector.shape_cast %41 : vector<32x128xf32> to vector<4x8x128xf32>
    %cst_10 = arith.constant dense<0.000000e+00> : vector<8x128xf32>
    %43 = vector.multi_reduction <add>, %42, %cst_10 [0] : vector<4x8x128xf32> to vector<8x128xf32>
    %c0_11 = arith.constant 0 : index
    %c0_12 = arith.constant 0 : index
    %c0_13 = arith.constant 0 : index
    %c0_14 = arith.constant 0 : index
    %44 = vector.load %arg4[%c0_11, %c0_12, %c0_13, %c0_14] : memref<1x9x8x128xf32, #tpu.memory_space<vmem>>, vector<1x1x8x128xf32>
    %45 = vector.shape_cast %44 : vector<1x1x8x128xf32> to vector<8x128xf32>
    %46 = arith.addf %45, %43 : vector<8x128xf32>
    %c0_15 = arith.constant 0 : index
    %c0_16 = arith.constant 0 : index
    %c0_17 = arith.constant 0 : index
    %c0_18 = arith.constant 0 : index
    %47 = vector.load %arg4[%c0_15, %c0_16, %c0_17, %c0_18] : memref<1x9x8x128xf32, #tpu.memory_space<vmem>>, vector<1x1x8x128xf32>
    %48 = vector.shape_cast %47 : vector<1x1x8x128xf32> to vector<8x128xf32>
    %49 = vector.shape_cast %46 : vector<8x128xf32> to vector<1x1x8x128xf32>
    tpu.vector_store %arg4[%c0_15, %c0_16, %c0_17, %c0_18], %49 {strides = array<i32>} : memref<1x9x8x128xf32, #tpu.memory_space<vmem>>, vector<1x1x8x128xf32>,
    %cst_19 = arith.constant 0.000000e+00 : f32
    %50 = vector.broadcast %cst_19 : f32 to vector<32x128xf32>
    %51 = arith.select %39, %21, %50 : vector<32x128xi1>, vector<32x128xf32>
    %52 = vector.shape_cast %51 : vector<32x128xf32> to vector<4x8x128xf32>
    %cst_20 = arith.constant dense<0.000000e+00> : vector<8x128xf32>
    %53 = vector.multi_reduction <add>, %52, %cst_20 [0] : vector<4x8x128xf32> to vector<8x128xf32>
    %c0_21 = arith.constant 0 : index
    %c1_22 = arith.constant 1 : index
    %c0_23 = arith.constant 0 : index
    %c0_24 = arith.constant 0 : index
    %54 = vector.load %arg4[%c0_21, %c1_22, %c0_23, %c0_24] : memref<1x9x8x128xf32, #tpu.memory_space<vmem>>, vector<1x1x8x128xf32>
    %55 = vector.shape_cast %54 : vector<1x1x8x128xf32> to vector<8x128xf32>
    %56 = arith.addf %55, %53 : vector<8x128xf32>
    %c0_25 = arith.constant 0 : index
    %c1_26 = arith.constant 1 : index
    %c0_27 = arith.constant 0 : index
    %c0_28 = arith.constant 0 : index
    %57 = vector.load %arg4[%c0_25, %c1_26, %c0_27, %c0_28] : memref<1x9x8x128xf32, #tpu.memory_space<vmem>>, vector<1x1x8x128xf32>
    %58 = vector.shape_cast %57 : vector<1x1x8x128xf32> to vector<8x128xf32>
    %59 = vector.shape_cast %56 : vector<8x128xf32> to vector<1x1x8x128xf32>
    tpu.vector_store %arg4[%c0_25, %c1_26, %c0_27, %c0_28], %59 {strides = array<i32>} : memref<1x9x8x128xf32, #tpu.memory_space<vmem>>, vector<1x1x8x128xf32>,
    %cst_29 = arith.constant 0.000000e+00 : f32
    %60 = vector.broadcast %cst_29 : f32 to vector<32x128xf32>
    %61 = arith.select %39, %22, %60 : vector<32x128xi1>, vector<32x128xf32>
    %62 = vector.shape_cast %61 : vector<32x128xf32> to vector<4x8x128xf32>
    %cst_30 = arith.constant dense<0.000000e+00> : vector<8x128xf32>
    %63 = vector.multi_reduction <add>, %62, %cst_30 [0] : vector<4x8x128xf32> to vector<8x128xf32>
    %c0_31 = arith.constant 0 : index
    %c2_32 = arith.constant 2 : index
    %c0_33 = arith.constant 0 : index
    %c0_34 = arith.constant 0 : index
    %64 = vector.load %arg4[%c0_31, %c2_32, %c0_33, %c0_34] : memref<1x9x8x128xf32, #tpu.memory_space<vmem>>, vector<1x1x8x128xf32>
    %65 = vector.shape_cast %64 : vector<1x1x8x128xf32> to vector<8x128xf32>
    %66 = arith.addf %65, %63 : vector<8x128xf32>
    %c0_35 = arith.constant 0 : index
    %c2_36 = arith.constant 2 : index
    %c0_37 = arith.constant 0 : index
    %c0_38 = arith.constant 0 : index
    %67 = vector.load %arg4[%c0_35, %c2_36, %c0_37, %c0_38] : memref<1x9x8x128xf32, #tpu.memory_space<vmem>>, vector<1x1x8x128xf32>
    %68 = vector.shape_cast %67 : vector<1x1x8x128xf32> to vector<8x128xf32>
    %69 = vector.shape_cast %66 : vector<8x128xf32> to vector<1x1x8x128xf32>
    tpu.vector_store %arg4[%c0_35, %c2_36, %c0_37, %c0_38], %69 {strides = array<i32>} : memref<1x9x8x128xf32, #tpu.memory_space<vmem>>, vector<1x1x8x128xf32>,
    %c1_i32_39 = arith.constant 1 : i32
    %70 = vector.broadcast %c1_i32_39 : i32 to vector<32x128xi32>
    %71 = arith.cmpi eq, %36, %70 : vector<32x128xi32>
    %72 = arith.andi %71, %34 : vector<32x128xi1>
    %cst_40 = arith.constant 0.000000e+00 : f32
    %73 = vector.broadcast %cst_40 : f32 to vector<32x128xf32>
    %74 = arith.select %72, %20, %73 : vector<32x128xi1>, vector<32x128xf32>
    %75 = vector.shape_cast %74 : vector<32x128xf32> to vector<4x8x128xf32>
    %cst_41 = arith.constant dense<0.000000e+00> : vector<8x128xf32>
    %76 = vector.multi_reduction <add>, %75, %cst_41 [0] : vector<4x8x128xf32> to vector<8x128xf32>
    %c0_42 = arith.constant 0 : index
    %c3 = arith.constant 3 : index
    %c0_43 = arith.constant 0 : index
    %c0_44 = arith.constant 0 : index
    %77 = vector.load %arg4[%c0_42, %c3, %c0_43, %c0_44] : memref<1x9x8x128xf32, #tpu.memory_space<vmem>>, vector<1x1x8x128xf32>
    %78 = vector.shape_cast %77 : vector<1x1x8x128xf32> to vector<8x128xf32>
    %79 = arith.addf %78, %76 : vector<8x128xf32>
    %c0_45 = arith.constant 0 : index
    %c3_46 = arith.constant 3 : index
    %c0_47 = arith.constant 0 : index
    %c0_48 = arith.constant 0 : index
    %80 = vector.load %arg4[%c0_45, %c3_46, %c0_47, %c0_48] : memref<1x9x8x128xf32, #tpu.memory_space<vmem>>, vector<1x1x8x128xf32>
    %81 = vector.shape_cast %80 : vector<1x1x8x128xf32> to vector<8x128xf32>
    %82 = vector.shape_cast %79 : vector<8x128xf32> to vector<1x1x8x128xf32>
    tpu.vector_store %arg4[%c0_45, %c3_46, %c0_47, %c0_48], %82 {strides = array<i32>} : memref<1x9x8x128xf32, #tpu.memory_space<vmem>>, vector<1x1x8x128xf32>,
    %cst_49 = arith.constant 0.000000e+00 : f32
    %83 = vector.broadcast %cst_49 : f32 to vector<32x128xf32>
    %84 = arith.select %72, %21, %83 : vector<32x128xi1>, vector<32x128xf32>
    %85 = vector.shape_cast %84 : vector<32x128xf32> to vector<4x8x128xf32>
    %cst_50 = arith.constant dense<0.000000e+00> : vector<8x128xf32>
    %86 = vector.multi_reduction <add>, %85, %cst_50 [0] : vector<4x8x128xf32> to vector<8x128xf32>
    %c0_51 = arith.constant 0 : index
    %c4 = arith.constant 4 : index
    %c0_52 = arith.constant 0 : index
    %c0_53 = arith.constant 0 : index
    %87 = vector.load %arg4[%c0_51, %c4, %c0_52, %c0_53] : memref<1x9x8x128xf32, #tpu.memory_space<vmem>>, vector<1x1x8x128xf32>
    %88 = vector.shape_cast %87 : vector<1x1x8x128xf32> to vector<8x128xf32>
    %89 = arith.addf %88, %86 : vector<8x128xf32>
    %c0_54 = arith.constant 0 : index
    %c4_55 = arith.constant 4 : index
    %c0_56 = arith.constant 0 : index
    %c0_57 = arith.constant 0 : index
    %90 = vector.load %arg4[%c0_54, %c4_55, %c0_56, %c0_57] : memref<1x9x8x128xf32, #tpu.memory_space<vmem>>, vector<1x1x8x128xf32>
    %91 = vector.shape_cast %90 : vector<1x1x8x128xf32> to vector<8x128xf32>
    %92 = vector.shape_cast %89 : vector<8x128xf32> to vector<1x1x8x128xf32>
    tpu.vector_store %arg4[%c0_54, %c4_55, %c0_56, %c0_57], %92 {strides = array<i32>} : memref<1x9x8x128xf32, #tpu.memory_space<vmem>>, vector<1x1x8x128xf32>,
    %cst_58 = arith.constant 0.000000e+00 : f32
    %93 = vector.broadcast %cst_58 : f32 to vector<32x128xf32>
    %94 = arith.select %72, %22, %93 : vector<32x128xi1>, vector<32x128xf32>
    %95 = vector.shape_cast %94 : vector<32x128xf32> to vector<4x8x128xf32>
    %cst_59 = arith.constant dense<0.000000e+00> : vector<8x128xf32>
    %96 = vector.multi_reduction <add>, %95, %cst_59 [0] : vector<4x8x128xf32> to vector<8x128xf32>
    %c0_60 = arith.constant 0 : index
    %c5 = arith.constant 5 : index
    %c0_61 = arith.constant 0 : index
    %c0_62 = arith.constant 0 : index
    %97 = vector.load %arg4[%c0_60, %c5, %c0_61, %c0_62] : memref<1x9x8x128xf32, #tpu.memory_space<vmem>>, vector<1x1x8x128xf32>
    %98 = vector.shape_cast %97 : vector<1x1x8x128xf32> to vector<8x128xf32>
    %99 = arith.addf %98, %96 : vector<8x128xf32>
    %c0_63 = arith.constant 0 : index
    %c5_64 = arith.constant 5 : index
    %c0_65 = arith.constant 0 : index
    %c0_66 = arith.constant 0 : index
    %100 = vector.load %arg4[%c0_63, %c5_64, %c0_65, %c0_66] : memref<1x9x8x128xf32, #tpu.memory_space<vmem>>, vector<1x1x8x128xf32>
    %101 = vector.shape_cast %100 : vector<1x1x8x128xf32> to vector<8x128xf32>
    %102 = vector.shape_cast %99 : vector<8x128xf32> to vector<1x1x8x128xf32>
    tpu.vector_store %arg4[%c0_63, %c5_64, %c0_65, %c0_66], %102 {strides = array<i32>} : memref<1x9x8x128xf32, #tpu.memory_space<vmem>>, vector<1x1x8x128xf32>,
    %c2_i32 = arith.constant 2 : i32
    %103 = vector.broadcast %c2_i32 : i32 to vector<32x128xi32>
    %104 = arith.cmpi eq, %36, %103 : vector<32x128xi32>
    %105 = arith.andi %104, %34 : vector<32x128xi1>
    %cst_67 = arith.constant 0.000000e+00 : f32
    %106 = vector.broadcast %cst_67 : f32 to vector<32x128xf32>
    %107 = arith.select %105, %20, %106 : vector<32x128xi1>, vector<32x128xf32>
    %108 = vector.shape_cast %107 : vector<32x128xf32> to vector<4x8x128xf32>
    %cst_68 = arith.constant dense<0.000000e+00> : vector<8x128xf32>
    %109 = vector.multi_reduction <add>, %108, %cst_68 [0] : vector<4x8x128xf32> to vector<8x128xf32>
    %c0_69 = arith.constant 0 : index
    %c6 = arith.constant 6 : index
    %c0_70 = arith.constant 0 : index
    %c0_71 = arith.constant 0 : index
    %110 = vector.load %arg4[%c0_69, %c6, %c0_70, %c0_71] : memref<1x9x8x128xf32, #tpu.memory_space<vmem>>, vector<1x1x8x128xf32>
    %111 = vector.shape_cast %110 : vector<1x1x8x128xf32> to vector<8x128xf32>
    %112 = arith.addf %111, %109 : vector<8x128xf32>
    %c0_72 = arith.constant 0 : index
    %c6_73 = arith.constant 6 : index
    %c0_74 = arith.constant 0 : index
    %c0_75 = arith.constant 0 : index
    %113 = vector.load %arg4[%c0_72, %c6_73, %c0_74, %c0_75] : memref<1x9x8x128xf32, #tpu.memory_space<vmem>>, vector<1x1x8x128xf32>
    %114 = vector.shape_cast %113 : vector<1x1x8x128xf32> to vector<8x128xf32>
    %115 = vector.shape_cast %112 : vector<8x128xf32> to vector<1x1x8x128xf32>
    tpu.vector_store %arg4[%c0_72, %c6_73, %c0_74, %c0_75], %115 {strides = array<i32>} : memref<1x9x8x128xf32, #tpu.memory_space<vmem>>, vector<1x1x8x128xf32>,
    %cst_76 = arith.constant 0.000000e+00 : f32
    %116 = vector.broadcast %cst_76 : f32 to vector<32x128xf32>
    %117 = arith.select %105, %21, %116 : vector<32x128xi1>, vector<32x128xf32>
    %118 = vector.shape_cast %117 : vector<32x128xf32> to vector<4x8x128xf32>
    %cst_77 = arith.constant dense<0.000000e+00> : vector<8x128xf32>
    %119 = vector.multi_reduction <add>, %118, %cst_77 [0] : vector<4x8x128xf32> to vector<8x128xf32>
    %c0_78 = arith.constant 0 : index
    %c7 = arith.constant 7 : index
    %c0_79 = arith.constant 0 : index
    %c0_80 = arith.constant 0 : index
    %120 = vector.load %arg4[%c0_78, %c7, %c0_79, %c0_80] : memref<1x9x8x128xf32, #tpu.memory_space<vmem>>, vector<1x1x8x128xf32>
    %121 = vector.shape_cast %120 : vector<1x1x8x128xf32> to vector<8x128xf32>
    %122 = arith.addf %121, %119 : vector<8x128xf32>
    %c0_81 = arith.constant 0 : index
    %c7_82 = arith.constant 7 : index
    %c0_83 = arith.constant 0 : index
    %c0_84 = arith.constant 0 : index
    %123 = vector.load %arg4[%c0_81, %c7_82, %c0_83, %c0_84] : memref<1x9x8x128xf32, #tpu.memory_space<vmem>>, vector<1x1x8x128xf32>
    %124 = vector.shape_cast %123 : vector<1x1x8x128xf32> to vector<8x128xf32>
    %125 = vector.shape_cast %122 : vector<8x128xf32> to vector<1x1x8x128xf32>
    tpu.vector_store %arg4[%c0_81, %c7_82, %c0_83, %c0_84], %125 {strides = array<i32>} : memref<1x9x8x128xf32, #tpu.memory_space<vmem>>, vector<1x1x8x128xf32>,
    %cst_85 = arith.constant 0.000000e+00 : f32
    %126 = vector.broadcast %cst_85 : f32 to vector<32x128xf32>
    %127 = arith.select %105, %22, %126 : vector<32x128xi1>, vector<32x128xf32>
    %128 = vector.shape_cast %127 : vector<32x128xf32> to vector<4x8x128xf32>
    %cst_86 = arith.constant dense<0.000000e+00> : vector<8x128xf32>
    %129 = vector.multi_reduction <add>, %128, %cst_86 [0] : vector<4x8x128xf32> to vector<8x128xf32>
    %c0_87 = arith.constant 0 : index
    %c8 = arith.constant 8 : index
    %c0_88 = arith.constant 0 : index
    %c0_89 = arith.constant 0 : index
    %130 = vector.load %arg4[%c0_87, %c8, %c0_88, %c0_89] : memref<1x9x8x128xf32, #tpu.memory_space<vmem>>, vector<1x1x8x128xf32>
    %131 = vector.shape_cast %130 : vector<1x1x8x128xf32> to vector<8x128xf32>
    %132 = arith.addf %131, %129 : vector<8x128xf32>
    %c0_90 = arith.constant 0 : index
    %c8_91 = arith.constant 8 : index
    %c0_92 = arith.constant 0 : index
    %c0_93 = arith.constant 0 : index
    %133 = vector.load %arg4[%c0_90, %c8_91, %c0_92, %c0_93] : memref<1x9x8x128xf32, #tpu.memory_space<vmem>>, vector<1x1x8x128xf32>
    %134 = vector.shape_cast %133 : vector<1x1x8x128xf32> to vector<8x128xf32>
    %135 = vector.shape_cast %132 : vector<8x128xf32> to vector<1x1x8x128xf32>
    tpu.vector_store %arg4[%c0_90, %c8_91, %c0_92, %c0_93], %135 {strides = array<i32>} : memref<1x9x8x128xf32, #tpu.memory_space<vmem>>, vector<1x1x8x128xf32>,
    return
  }
  func.func @transform_0(%arg0: i32, %arg1: i32) -> (i32, i32, i32) {
    %c1_i32 = arith.constant 1 : i32
    %0 = arith.muli %arg0, %c1_i32 : i32
    %1 = arith.addi %0, %arg1 : i32
    %c0_i32 = arith.constant 0 : i32
    %2 = arith.minsi %1, %c0_i32 : i32
    %c0_i32_0 = arith.constant 0 : i32
    %c0_i32_1 = arith.constant 0 : i32
    %c0_i32_2 = arith.constant 0 : i32
    return %c0_i32_0, %2, %c0_i32_1 : i32, i32, i32
  }
  func.func @transform_1(%arg0: i32, %arg1: i32) -> (i32, i32) {
    %c1_i32 = arith.constant 1 : i32
    %0 = arith.muli %arg0, %c1_i32 : i32
    %1 = arith.addi %0, %arg1 : i32
    %c0_i32 = arith.constant 0 : i32
    %2 = arith.minsi %1, %c0_i32 : i32
    %c0_i32_0 = arith.constant 0 : i32
    %c0_i32_1 = arith.constant 0 : i32
    return %2, %c0_i32_0 : i32, i32
  }
  func.func @transform_2(%arg0: i32, %arg1: i32) -> (i32, i32, i32, i32) {
    %c0_i32 = arith.constant 0 : i32
    %c0_i32_0 = arith.constant 0 : i32
    %c0_i32_1 = arith.constant 0 : i32
    %c0_i32_2 = arith.constant 0 : i32
    return %arg0, %c0_i32, %c0_i32_0, %c0_i32_1 : i32, i32, i32, i32
  }
}

</mosaic_0001>

<bundles_post_ra>
// kernel: _lambda_.1
= control target key start
LH: loop header
LB: loop body
LE: loop exit
PB: predicated region body
PF: predicated region fallthrough
CT: control target
= control target key end

     0   :  { %s676_s9 = smov 0   ;;  %s678_s10 = smov 0   ;;  %s1035_s0 = inlined_call_operand.vmem [shape: f32[3,32,128], index: 0, kind: input, shape index: {}]   ;;  %s1036_s1 = inlined_call_operand.vmem [shape: s8[32,128], index: 1, kind: input, shape index: {}]   ;;  %s1037_s2 = inlined_call_operand.vmem [shape: f32[2,9,8,128], index: 2, kind: output, shape index: {}]  }
   0x1   :  { %s680_s11 = smov 0  }
   0x2 LB: > { %s24_s12 = sadd.s32 1, %s655_s10  ;;  %p544_p0 = scmp.ge.s32.totalorder %s659_s11, 1  ;;  %s659_s11 = sphi %s680_s11, %s12_s11   ;;  %s655_s10 = sphi %s678_s10, %s1065_s10   ;;  %s651_s9 = sphi %s676_s9, %s1064_s9  }
   0x3   : > { %p26_p1 = scmp.ge.s32.totalorder %s24_s12, 2  ;;  %p158_p2 = scmp.lt.s32.totalorder %s659_s11, 3 }
   0x5   : > { %s1067_s12 = smov (%p26_p1, %s24_s12), 0  ;;  %p159_p3 = pnand %p544_p0, %p158_p2 }
   0x6   : > { %p191_p4 = scmp.lt.s32.totalorder (!%p159_p3), %s651_s9, 0  ;;  %v312_v42 = vlaneseq (!%p159_p3)  ;;  %s560_s19 = sshll.u32 (!%p159_p3), %s651_s9, 5 }
   0x7   : > { %162 = sbr.rel (%p159_p3) target bundleno = 89 (0x59), region = 28  ;;  %v321_v52 = vstv (!%p159_p3), %s560_s19  ;;  %p212_p6 = scmp.lt.s32.totalorder (!%p159_p3), %s651_s9, 1 }
   0x8   : > { %v313_v45 = vshrl.u32 (!%p159_p3), %v312_v42, 7 }
   0xa   : > { %v314_v50 = vadd.s32 (!%p159_p3), 8, %v313_v45  ;;  %v315_v51 = vadd.s32 (!%p159_p3), 16, %v313_v45  ;;  %v316_v54 = vadd.s32 (!%p159_p3), 24, %v313_v45  ;;  %v322_v59 = vadd.s32 (!%p159_p3), %v321_v52, %v313_v45 }
   0xc   : > { %v323_v62 = vadd.s32 (!%p159_p3), %v321_v52, %v314_v50  ;;  %v324_v63 = vadd.s32 (!%p159_p3), %v321_v52, %v315_v51 }
   0xe   : > { %s700_s13 = scalar_select %p191_p4, %s651_s9, 0 }
   0xf   : > { %s1073_s9 = smov (!%p212_p6, %s651_s9), 1 }
  0x10   : > { %s545_s14 = sshll.u32 %s700_s13, 2  ;;  %s1071_s13 = smov (!%p191_p4, %s700_s13), 0 }
  0x11   : > { %p194_p5 = scmp.lt.s32.totalorder %s545_s14, 3  ;;  %s550_s20 = sshll.u32 %s1071_s13, 3 }
  0x12   : > { %s208_s23 = scalar_lea.vmem %s1036_s1, %s550_s20  ;;  %s579_s24 = smul.u32 72, %s1073_s9 }
  0x13   : > { %s1069_s14 = smov (!%p194_p5, %s545_s14), 3 }
  0x14   : > { %s546_s15 = sshll.u32 %s1069_s14, 3  ;;  %s920_s27 = scalar_lea.vmem %s1037_s2, %s579_s24 }
  0x15   : > { %s197_s18 = scalar_lea.vmem %s1035_s0, %s546_s15 }
  0x16   : > { %v230_v0 = vld [vmem:[%s197_s18] sm:$0xff]  ;;  %v231_v1 = vld [vmem:[%s197_s18 + $0x8] sm:$0xff]  ;;  %v232_v2 = vld [vmem:[%s197_s18 + $0x10] sm:$0xff] }
  0x17   : > { %v233_v3 = vld [vmem:[%s197_s18 + $0x18] sm:$0xff]  ;;  %v552_v4 = vld [vmem:[%s197_s18 + $0x20] sm:$0xff]  ;;  %v553_v5 = vld [vmem:[%s197_s18 + $0x28] sm:$0xff] }
  0x18   : > { %v554_v6 = vld [vmem:[%s197_s18 + $0x30] sm:$0xff]  ;;  %v555_v7 = vld [vmem:[%s197_s18 + $0x38] sm:$0xff]  ;;  %v556_v8 = vld [vmem:[%s197_s18 + $0x40] sm:$0xff]  ;;  %v244_v9 = vmax.f32 %v230_v0, %v552_v4  ;;  %v245_v10 = vmax.f32 %v231_v1, %v553_v5 }
  0x19   : > { %v557_v11 = vld [vmem:[%s197_s18 + $0x48] sm:$0xff]  ;;  %v558_v12 = vld [vmem:[%s197_s18 + $0x50] sm:$0xff]  ;;  %v559_v13 = vld [vmem:[%s197_s18 + $0x58] sm:$0xff]  ;;  %v246_v14 = vmax.f32 %v232_v2, %v554_v6  ;;  %v247_v15 = vmax.f32 %v233_v3, %v555_v7 }
  0x1a   : > { %v248_v16 = vmax.f32 %v244_v9, %v556_v8  ;;  %v249_v17 = vmax.f32 %v245_v10, %v557_v11 }
  0x1b   : > { %v250_v18 = vmax.f32 %v246_v14, %v558_v12  ;;  %v251_v19 = vmax.f32 %v247_v15, %v559_v13 }
  0x1c   : > { %v252_v20 = vsub.f32 %v230_v0, %v248_v16  ;;  %v253_v21 = vsub.f32 %v231_v1, %v249_v17  ;;  %v264_v22 = vsub.f32 %v552_v4, %v248_v16  ;;  %v265_v25 = vsub.f32 %v553_v5, %v249_v17 }
  0x1d   : > { %v254_v23 = vsub.f32 %v232_v2, %v250_v18  ;;  %v255_v24 = vsub.f32 %v233_v3, %v251_v19  ;;  %v266_v28 = vsub.f32 %v554_v6, %v250_v18  ;;  %v267_v31 = vsub.f32 %v555_v7, %v251_v19 }
  0x1e   : > { %v256_v26 = vmul.f32 1.442695, %v252_v20  ;;  %v258_v27 = vmul.f32 1.442695, %v253_v21  ;;  %v268_v32 = vmul.f32 1.442695, %v264_v22  ;;  %v276_v33 = vsub.f32 %v556_v8, %v248_v16 }
  0x1f   : > { %v260_v29 = vmul.f32 1.442695, %v254_v23  ;;  %v262_v30 = vmul.f32 1.442695, %v255_v24  ;;  %v270_v34 = vmul.f32 1.442695, %v265_v25  ;;  %v277_v35 = vsub.f32 %v557_v11, %v249_v17 }
  0x20   : > { %605 = vpow2.f32 %v256_v26  ;;  %v272_v36 = vmul.f32 1.442695, %v266_v28  ;;  %v278_v37 = vsub.f32 %v558_v12, %v250_v18  ;;  %v274_v38 = vmul.f32 1.442695, %v267_v31 }
  0x21   : > { %607 = vpow2.f32 %v258_v27  ;;  %v279_v39 = vsub.f32 %v559_v13, %v251_v19  ;;  %v280_v40 = vmul.f32 1.442695, %v276_v33  ;;  %v282_v41 = vmul.f32 1.442695, %v277_v35  ;;  %v338_v13 = vld [vmem:[%s208_s23] sm:$0xff] }
  0x22   : > { %609 = vpow2.f32 %v260_v29  ;;  %v284_v43 = vmul.f32 1.442695, %v278_v37  ;;  %v325_v2 = vadd.s32 %v321_v52, %v316_v54  ;;  %v318_v7 = vand.u32 127, %v312_v42 }
  0x23   : > { %611 = vpow2.f32 %v262_v30  ;;  %v286_v44 = vmul.f32 1.442695, %v279_v39  ;;  %v326_v8 = vmul.u32 128, %v322_v59  ;;  %v327_v11 = vmul.u32 128, %v323_v62 }
  0x24   : > { %613 = vpow2.f32 %v268_v32  ;;  %v328_v12 = vmul.u32 128, %v324_v63  ;;  %v329_v15 = vmul.u32 128, %v325_v2  ;;  %v742_v17 = vunpack.c.0.s8 %v338_v13 }
  0x25   : > { %615 = vpow2.f32 %v270_v34  ;;  %v740_v16 = vadd.s32 %v326_v8, %v318_v7  ;;  %v744_v18 = vadd.s32 %v327_v11, %v318_v7  ;;  %v748_v20 = vunpack.c.1.s8 %v338_v13 }
  0x26   : > { %617 = vpow2.f32 %v272_v36  ;;  %v746_v19 = vadd.s32 %v328_v12, %v318_v7  ;;  %v750_v21 = vadd.s32 %v329_v15, %v318_v7  ;;  %v752_v22 = vunpack.c.2.s8 %v338_v13 }
  0x27   : > { %619 = vpow2.f32 %v274_v38  ;;  %v754_v23 = vunpack.c.3.s8 %v338_v13  ;;  %vm334_vm0 = vcmp.lt.s32.totalorder %v740_v16, 4  ;;  %vm343_vm1 = vcmp.eq.s32.totalorder %v742_v17, 0 }
  0x28   : > { %621 = vpow2.f32 %v280_v40  ;;  %vm335_vm2 = vcmp.lt.s32.totalorder %v744_v18, 4  ;;  %vm336_vm3 = vcmp.lt.s32.totalorder %v746_v19, 4  ;;  %vm344_vm4 = vcmp.eq.s32.totalorder %v748_v20, 0  ;;  %vm768_vm9 = vmand %vm343_vm1, %vm334_vm0 }
  0x29   : > { %623 = vpow2.f32 %v282_v41  ;;  %vm337_vm5 = vcmp.lt.s32.totalorder %v750_v21, 4  ;;  %vm345_vm6 = vcmp.eq.s32.totalorder %v752_v22, 0  ;;  %vm346_vm7 = vcmp.eq.s32.totalorder %v754_v23, 0  ;;  %vm781_vm14 = vmand %vm344_vm4, %vm335_vm2 }
  0x2a   : > { %v706_v46 = vpop.eup %605  ;;  %625 = vpow2.f32 %v284_v43  ;;  %vm383_vm8 = vcmp.eq.s32.totalorder %v742_v17, 1  ;;  %vm384_vm10 = vcmp.eq.s32.totalorder %v748_v20, 1  ;;  %vm385_vm11 = vcmp.eq.s32.totalorder %v752_v22, 1  ;;  %vm801_vm4 = vmand %vm345_vm6, %vm336_vm3 }
  0x2b   : > { %v709_v47 = vpop.eup %607  ;;  %627 = vpow2.f32 %v286_v44  ;;  %vm386_vm12 = vcmp.eq.s32.totalorder %v754_v23, 1  ;;  %vm424_vm13 = vcmp.eq.s32.totalorder %v742_v17, 2  ;;  %vm425_vm15 = vcmp.eq.s32.totalorder %v748_v20, 2  ;;  %vm819_vm6 = vmand %vm346_vm7, %vm337_vm5 }
  0x2c   : > { %v714_v48 = vpop.eup %609  ;;  %vm849_vm7 = vmand %vm383_vm8, %vm334_vm0 }
  0x2d   : > { %v716_v49 = vpop.eup %611  ;;  %vm863_vm1 = vmand %vm384_vm10, %vm335_vm2 }
  0x2e   : > { %v614_v53 = vpop.eup %613  ;;  %vm884_vm8 = vmand %vm385_vm11, %vm336_vm3 }
  0x2f   : > { %v718_v55 = vpop.eup %615  ;;  %v288_v56 = vadd.f32 %v614_v53, %v706_v46  ;;  %vm898_vm10 = vmand %vm386_vm12, %vm337_vm5 }
  0x30   : > { %v721_v57 = vpop.eup %617  ;;  %v289_v58 = vadd.f32 %v718_v55, %v709_v47  ;;  %vm946_vm11 = vmand %vm425_vm15, %vm335_vm2  ;;  %vm1061_vm2 = vcmp.eq.s32.totalorder %v754_v23, 2 }
  0x31   : > { %v725_v60 = vpop.eup %619  ;;  %v290_v61 = vadd.f32 %v721_v57, %v714_v48 }
  0x32   : > { %v622_v0 = vpop.eup %621  ;;  %v291_v1 = vadd.f32 %v725_v60, %v716_v49 }
  0x33   : > { %v624_v3 = vpop.eup %623  ;;  %v292_v4 = vadd.f32 %v622_v0, %v288_v56 }
  0x34   : > { %v734_v5 = vpop.eup %625  ;;  %v293_v6 = vadd.f32 %v624_v3, %v289_v58 }
  0x35   : > { %v736_v9 = vpop.eup %627  ;;  %v294_v10 = vadd.f32 %v734_v5, %v290_v61  ;;  %629 = vrcp.f32 %v292_v4 }
  0x36   : > { %v295_v14 = vadd.f32 %v736_v9, %v291_v1  ;;  %631 = vrcp.f32 %v293_v6 }
  0x37   : > { %633 = vrcp.f32 %v294_v10 }
  0x38   : > { %635 = vrcp.f32 %v295_v14 }
  0x3f   : > { %v630_v24 = vpop.eup %629 }
  0x40   : > { %v632_v26 = vpop.eup %631  ;;  %v777_v27 = vmul.f32 %v630_v24, %v706_v46  ;;  %v785_v29 = vmul.f32 %v630_v24, %v614_v53  ;;  %v808_v34 = vmul.f32 %v630_v24, %v622_v0 }
  0x41   : > { %v634_v30 = vpop.eup %633  ;;  %v795_v31 = vmul.f32 %v632_v26, %v709_v47  ;;  %v806_v33 = vmul.f32 %v632_v26, %v718_v55  ;;  %v810_v35 = vmul.f32 %v632_v26, %v624_v3 }
  0x42   : > { %v636_v36 = vpop.eup %635  ;;  %v813_v37 = vmul.f32 %v634_v30, %v714_v48  ;;  %v351_v39 = vsel %vm768_vm9, %v777_v27, 0.0  ;;  %v827_v40 = vmul.f32 %v634_v30, %v721_v57  ;;  %v361_v41 = vsel %vm768_vm9, %v785_v29, 0.0 }
  0x43   : > { %v834_v42 = vmul.f32 %v636_v36, %v716_v49  ;;  %v352_v43 = vsel %vm781_vm14, %v795_v31, 0.0  ;;  %v840_v44 = vmul.f32 %v636_v36, %v725_v60  ;;  %v362_v45 = vsel %vm781_vm14, %v806_v33, 0.0 }
  0x44   : > { %v353_v47 = vsel %vm801_vm4, %v813_v37, 0.0  ;;  %v355_v48 = vadd.f32 %v352_v43, %v351_v39  ;;  %v363_v49 = vsel %vm801_vm4, %v827_v40, 0.0  ;;  %v365_v50 = vadd.f32 %v362_v45, %v361_v41 }
  0x45   : > { %v354_v52 = vsel %vm819_vm6, %v834_v42, 0.0  ;;  %v364_v53 = vsel %vm819_vm6, %v840_v44, 0.0  ;;  %v875_v54 = vmul.f32 %v634_v30, %v734_v5  ;;  %v878_v55 = vmul.f32 %v636_v36, %v736_v9 }
  0x46   : > { %v356_v57 = vadd.f32 %v355_v48, %v353_v47  ;;  %v366_v58 = vadd.f32 %v365_v50, %v363_v49  ;;  %v372_v59 = vsel %vm768_vm9, %v808_v34, 0.0  ;;  %v373_v60 = vsel %vm781_vm14, %v810_v35, 0.0  ;;  %vm932_vm9 = vmand %vm424_vm13, %vm334_vm0 }
  0x47   : > { %v374_v62 = vsel %vm801_vm4, %v875_v54, 0.0  ;;  %v375_v63 = vsel %vm819_vm6, %v878_v55, 0.0  ;;  %v376_v0 = vadd.f32 %v373_v60, %v372_v59  ;;  %v391_v1 = vsel %vm849_vm7, %v777_v27, 0.0 }
  0x48   : > { %v357_v2 = vadd.f32 %v356_v57, %v354_v52  ;;  %v367_v3 = vadd.f32 %v366_v58, %v364_v53  ;;  %v392_v4 = vsel %vm863_vm1, %v795_v31, 0.0  ;;  %v393_v5 = vsel %vm884_vm8, %v813_v37, 0.0 }
  0x49   : > { %v377_v6 = vadd.f32 %v376_v0, %v374_v62  ;;  %v394_v7 = vsel %vm898_vm10, %v834_v42, 0.0  ;;  %v395_v8 = vadd.f32 %v392_v4, %v391_v1  ;;  %v402_v9 = vsel %vm849_vm7, %v785_v29, 0.0 }
  0x4a   : > { %v403_v11 = vsel %vm863_vm1, %v806_v33, 0.0  ;;  %v404_v12 = vsel %vm884_vm8, %v827_v40, 0.0  ;;  %vm1058_vm0 = vcmp.eq.s32.totalorder %v752_v22, 2  ;;  %360 = vst [vmem:[%s920_s27] sm:$0xff] %v357_v2  ;;  %562 = vst [vmem:[%s920_s27 + $0x8] sm:$0xff] %v367_v3  ;;  %v405_v18 = vsel %vm898_vm10, %v840_v44, 0.0 }
  0x4b   : > { %v378_v14 = vadd.f32 %v377_v6, %v375_v63  ;;  %v396_v15 = vadd.f32 %v395_v8, %v393_v5  ;;  %v406_v16 = vadd.f32 %v403_v11, %v402_v9  ;;  %vm954_vm12 = vmand %vm1058_vm0, %vm336_vm3  ;;  %v413_v20 = vsel %vm849_vm7, %v808_v34, 0.0 }
  0x4c   : > { %v414_v19 = vsel %vm863_vm1, %v810_v35, 0.0  ;;  %v415_v22 = vsel %vm884_vm8, %v875_v54, 0.0  ;;  %vm976_vm3 = vmand %vm1061_vm2, %vm337_vm5  ;;  %v416_v30 = vsel %vm898_vm10, %v878_v55, 0.0  ;;  %v432_v32 = vsel %vm932_vm9, %v777_v27, 0.0 }
  0x4d   : > { %v397_v24 = vadd.f32 %v396_v15, %v394_v7  ;;  %v407_v25 = vadd.f32 %v406_v16, %v404_v12  ;;  %v417_v26 = vadd.f32 %v414_v19, %v413_v20  ;;  %v433_v36 = vsel %vm946_vm11, %v795_v31, 0.0  ;;  %564 = vst [vmem:[%s920_s27 + $0x10] sm:$0xff] %v378_v14 }
  0x4e   : > { %v434_v21 = vsel %vm954_vm12, %v813_v37, 0.0  ;;  %v436_v39 = vadd.f32 %v433_v36, %v432_v32  ;;  %v435_v41 = vsel %vm976_vm3, %v834_v42, 0.0  ;;  %v443_v27 = vsel %vm932_vm9, %v785_v29, 0.0 }
  0x4f   : > { %v408_v23 = vadd.f32 %v407_v25, %v405_v18  ;;  %v418_v38 = vadd.f32 %v417_v26, %v415_v22  ;;  %v444_v31 = vsel %vm946_vm11, %v806_v33, 0.0  ;;  %v445_v37 = vsel %vm954_vm12, %v827_v40, 0.0  ;;  %566 = vst [vmem:[%s920_s27 + $0x18] sm:$0xff] %v397_v24 }
  0x50   : > { %v437_v45 = vadd.f32 %v436_v39, %v434_v21  ;;  %v447_v46 = vadd.f32 %v444_v31, %v443_v27  ;;  %v446_v29 = vsel %vm976_vm3, %v840_v44, 0.0  ;;  %v454_v42 = vsel %vm932_vm9, %v808_v34, 0.0 }
  0x51   : > { %v419_v43 = vadd.f32 %v418_v38, %v416_v30  ;;  %v455_v33 = vsel %vm946_vm11, %v810_v35, 0.0  ;;  %v456_v40 = vsel %vm954_vm12, %v875_v54, 0.0  ;;  %568 = vst [vmem:[%s920_s27 + $0x20] sm:$0xff] %v408_v23  ;;  %v457_v44 = vsel %vm976_vm3, %v878_v55, 0.0 }
  0x52   : > { %v438_v47 = vadd.f32 %v437_v45, %v435_v41  ;;  %v448_v48 = vadd.f32 %v447_v46, %v445_v37  ;;  %v458_v49 = vadd.f32 %v455_v33, %v454_v42 }
  0x53   : > { %570 = vst [vmem:[%s920_s27 + $0x28] sm:$0xff] %v419_v43 }
  0x54   : > { %v449_v50 = vadd.f32 %v448_v48, %v446_v29  ;;  %v459_v51 = vadd.f32 %v458_v49, %v456_v40  ;;  %572 = vst [vmem:[%s920_s27 + $0x30] sm:$0xff] %v438_v47 }
  0x56   : > { %v460_v34 = vadd.f32 %v459_v51, %v457_v44  ;;  %574 = vst [vmem:[%s920_s27 + $0x38] sm:$0xff] %v449_v50 }
  0x58   : > { %576 = vst [vmem:[%s920_s27 + $0x40] sm:$0xff] %v460_v34 }
  0x59 PF: > { %s12_s11 = sadd.s32 1, %s659_s11   ;;  %s1064_s9 = smov %s655_s10 }
  0x5a   : > { %p9_p7 = scmp.ge.s32.totalorder %s12_s11, 4   ;;  %s1065_s10 = smov %s1067_s12 }
  0x5c   :  { %11 = sbr.rel (!%p9_p7) target bundleno = 2 (0x2), region = 75 }

</bundles_post_ra>
